<compile_context>
chip_gen: v6e
topology: v6e:2x2x1
jax: 0.10.0
libtpu: 0.0.40
codegen_flags: <defaults>
</compile_context>

<pallas_src>
import math

import jax
import jax.numpy as jnp
from jax.experimental import pallas as pl
from jax.experimental.pallas import tpu as pltpu

_MIB = 1024 * 1024


# ----------------------------------------------------------------------------
# Activation
# ----------------------------------------------------------------------------
def _gelu_tanh(x):
    # tanh-approx GELU (the module's `activation` is a ctor argument; GELU is
    # assumed here).
    # TODO(synk): torch.nn.GELU defaults to the erf form; swap in an erf-based
    # gelu if exact parity with that default is required.
    c = math.sqrt(2.0 / math.pi)
    return 0.5 * x * (1.0 + jnp.tanh(c * (x + 0.044715 * x * x * x)))


# ----------------------------------------------------------------------------
# Pallas kernel:
#   x -> (x@W1a^T, x@W1b^T) -> GELU(x1)*x2*bias_vec -> g @ W_eff^T + b_eff
# ----------------------------------------------------------------------------
def wave_expert_kernel(x_ref, w1a_ref, w1b_ref, bvec_ref, weff_ref, beff_ref, o_ref):
    x = x_ref[...]                                                     # (tm, D)

    # Two resident (D, D) halves instead of one (tm, 2D) matmul + slicing:
    # smaller live f32 intermediates and two independent MXU pushes that the
    # scheduler can overlap with the VPU/EUP gate math.
    x1 = jnp.dot(x, w1a_ref[...], preferred_element_type=jnp.float32)  # (tm, D) f32
    x2 = jnp.dot(x, w1b_ref[...], preferred_element_type=jnp.float32)  # (tm, D) f32

    # GEGLU gate in f32 (VPU/EUP), scaled by the learned bias vector.
    g = _gelu_tanh(x1) * x2 * bvec_ref[...]                            # (tm, D) f32

    # Noisy output projection: W_eff already contains the factorized noise
    # (folded on the wrapper side), so this is a single dense MXU matmul.
    out = jnp.dot(g.astype(weff_ref.dtype), weff_ref[...],
                  preferred_element_type=jnp.float32)                  # (tm, D) f32
    o_ref[...] = (out + beff_ref[...]).astype(o_ref.dtype)


def wave_expert_pallas(x2d, w1a_t, w1b_t, bvec, weff_t, beff, *, tm, out_dtype,
                       vmem_limit_bytes, cost_estimate, single_buffer_weights):
    """x2d: (M, D) with M a multiple of tm; weights pre-transposed."""
    M, D = x2d.shape
    assert M % tm == 0, (M, tm)

    def const_spec(shape):
        # Grid-invariant inputs: the pipeline never re-DMAs them, so single
        # buffering halves their VMEM footprint (3x(D,D) weights).
        if single_buffer_weights:
            return pl.BlockSpec(shape, lambda i: (0, 0), pipeline_mode=pl.Buffered(1))
        return pl.BlockSpec(shape, lambda i: (0, 0))

    return pl.pallas_call(
        wave_expert_kernel,
        out_shape=jax.ShapeDtypeStruct((M, D), out_dtype),
        grid_spec=pltpu.PrefetchScalarGridSpec(
            num_scalar_prefetch=0,
            grid=(M // tm,),
            in_specs=[
                pl.BlockSpec((tm, D), lambda i: (i, 0)),   # x tile (streamed)
                const_spec((D, D)),                        # W1a^T (resident)
                const_spec((D, D)),                        # W1b^T (resident)
                const_spec((1, D)),                        # bias vector (f32)
                const_spec((D, D)),                        # W_eff^T (resident)
                const_spec((1, D)),                        # b_eff (f32)
            ],
            out_specs=pl.BlockSpec((tm, D), lambda i: (i, 0)),
        ),
        compiler_params=pltpu.CompilerParams(
            dimension_semantics=("parallel",),             # megacore / 2-TC sharding
            vmem_limit_bytes=vmem_limit_bytes,
        ),
        cost_estimate=cost_estimate,
    )(x2d, w1a_t, w1b_t, bvec, weff_t, beff)


# ----------------------------------------------------------------------------
# Hardware helpers
# ----------------------------------------------------------------------------
def _vmem_capacity_bytes():
    """Best-effort physical per-core VMEM capacity."""
    try:
        return int(pltpu.get_tpu_info().vmem_capacity_bytes)
    except Exception:
        pass
    try:
        kind = jax.devices()[0].device_kind.lower()
    except Exception:
        kind = ""
    if any(tag in kind for tag in ("v4", "v5", "v6")):
        return 128 * _MIB
    return 64 * _MIB  # conservative default (v7x per-TC VMEM)


def _round_up(a, b):
    return -(-a // b) * b


# ----------------------------------------------------------------------------
# Plain-JAX glue: parameter init, one-time weight prep, per-call noise
# ----------------------------------------------------------------------------
def init_params(key, in_embed):
    k1, k2, k3 = jax.random.split(key, 3)
    D = in_embed
    bound = 1.0 / math.sqrt(D)
    # linear_in: Linear(D, 2D, bias=False), weight shape (2D, D)
    w1 = jax.random.uniform(k1, (2 * D, D), jnp.float32, -bound, bound)
    # self.bias = nn.Parameter(ones(D))
    bias_vec = jnp.ones((D,), jnp.float32)
    # NoisyFactorizedLinear(D, D, bias=True), sigma_zero = 0.4
    w2 = jax.random.uniform(k2, (D, D), jnp.float32, -bound, bound)
    b2 = jax.random.uniform(k3, (D,), jnp.float32, -bound, bound)
    sigma_init = 0.4 / math.sqrt(D)
    # sigma_weight is a full per-element (D, D) parameter in the module; the
    # wrapper-side W_eff fold supports it exactly (incl. trained values).
    sigma_w = jnp.full((D, D), sigma_init, jnp.float32)
    sigma_b = jnp.full((D,), sigma_init, jnp.float32)
    return dict(w1=w1, bias_vec=bias_vec, w2=w2, b2=b2,
                sigma_w=sigma_w, sigma_b=sigma_b)


def factorized_noise(noise_key, D):
    """Factorized NoisyNet noise: f(x) = sign(x) * sqrt(|x|)."""
    ki, ko = jax.random.split(noise_key)
    f = lambda v: jnp.sign(v) * jnp.sqrt(jnp.abs(v))
    eps_in = f(jax.random.normal(ki, (D,), jnp.float32))
    eps_out = f(jax.random.normal(ko, (D,), jnp.float32))
    return eps_in, eps_out


def prepare_expert(params, compute_dtype=jnp.bfloat16):
    """One-time weight prep (transpose + cast). Call once, reuse every forward."""
    D = params["bias_vec"].shape[0]
    w1 = params["w1"]
    return dict(
        compute_dtype=jnp.dtype(compute_dtype),
        # GEGLU halves of W1, pre-transposed for x @ W^T and pre-cast for the MXU.
        w1a_t=w1[:D].T.astype(compute_dtype),      # (D, D)
        w1b_t=w1[D:].T.astype(compute_dtype),      # (D, D)
        bvec=params["bias_vec"].reshape(1, D).astype(jnp.float32),
        # Raw noisy-linear params: the noise fold is per-call, so W_eff^T is
        # rebuilt each forward (it fuses into that transpose/cast pass).
        w2=params["w2"], sigma_w=params["sigma_w"],
        b2=params["b2"], sigma_b=params["sigma_b"],
    )


def wave_expert_forward(x, expert, noise_key, *, tm=None, out_dtype=None):
    # TODO(synk): Dropout1d is identity in eval mode; training-mode channel
    # dropout is not implemented here.
    B, S, D = x.shape
    M = B * S
    cd = expert["compute_dtype"]
    out_dtype = x.dtype if out_dtype is None else out_dtype

    # Per-call factorized NoisyNet noise, folded into W2 / b2 on the host so
    # the kernel sees a plain dense projection (exact NoisyFactorizedLinear
    # semantics for per-element sigma_weight).
    eps_in, eps_out = factorized_noise(noise_key, D)
    w_eff = expert["w2"] + expert["sigma_w"] * (eps_out[:, None] * eps_in[None, :])
    w_eff_t = w_eff.T.astype(cd)                                           # (D, D)
    b_eff = (expert["b2"] + expert["sigma_b"] * eps_out).reshape(1, D).astype(jnp.float32)

    # --- tiling ---------------------------------------------------------------
    vmem_cap = _vmem_capacity_bytes()
    if tm is None:
        # Bigger tiles on 128 MiB chips (v5e/v6e), tighter on v7x (64 MiB).
        tm = 512 if (vmem_cap >= 96 * _MIB and D <= 2048) else 256
    sub = 16 if jnp.dtype(cd).itemsize == 2 else 8     # bf16 packs 2 rows / sublane
    tile = _round_up(min(tm, _round_up(M, sub)), sub)
    # Prefer >= 4 grid steps when there is enough work (keeps both v7x
    # TensorCores busy and the x/out pipeline deep).
    while tile > 128 and -(-M // tile) < 4:
        tile = max(128, _round_up(tile // 2, sub))
    m_pad = _round_up(M, tile)

    x2d = x.reshape(M, D)
    if m_pad != M:
        x2d = jnp.pad(x2d, ((0, m_pad - M), (0, 0)))
    x2d = x2d.astype(cd)

    # --- VMEM budget / cost hint ------------------------------------------------
    wb = jnp.dtype(cd).itemsize
    ob = jnp.dtype(out_dtype).itemsize

    def vmem_need(weight_bufs):
        return (3 * D * D * wb * weight_bufs           # W1a^T, W1b^T, W_eff^T
                + 2 * 2 * D * 4                        # (1, D) f32 vectors
                + 2 * tile * D * wb                    # x tile, double-buffered
                + 2 * tile * D * ob                    # out tile, double-buffered
                + 4 * tile * D * 4)                    # f32 intermediates headroom

    def vmem_limit(weight_bufs):
        return int(min(0.85 * vmem_cap,
                       max(1.25 * vmem_need(weight_bufs), 32 * _MIB)))

    cost = pl.CostEstimate(
        flops=6 * m_pad * D * D,                       # three (tm,D)x(D,D) matmuls
        transcendentals=m_pad * D,                     # tanh in the GELU gate
        bytes_accessed=(m_pad * D * (wb + ob) + 3 * D * D * wb + 4 * D * 4),
    )

    def run(single_buffer_weights):
        return wave_expert_pallas(
            x2d, expert["w1a_t"], expert["w1b_t"], expert["bvec"], w_eff_t, b_eff,
            tm=tile, out_dtype=out_dtype,
            vmem_limit_bytes=vmem_limit(1 if single_buffer_weights else 2),
            cost_estimate=cost,
            single_buffer_weights=single_buffer_weights)

    try:
        # Grid-invariant weights single-buffered: halves resident-weight VMEM.
        out = run(True)
    except Exception:
        # Fallback for jax/libtpu versions without pipeline_mode=pl.Buffered(1).
        out = run(False)

    return out[:M].reshape(B, S, D)


def wave_expert_reference(x, params, noise_key):
    """Pure-JAX f32 reference for correctness checking."""
    D = params["bias_vec"].shape[0]
    eps_in, eps_out = factorized_noise(noise_key, D)
    w_eff = params["w2"] + params["sigma_w"] * (eps_out[:, None] * eps_in[None, :])
    b_eff = params["b2"] + params["sigma_b"] * eps_out
    h = x @ params["w1"].T
    x1, x2 = h[..., :D], h[..., D:]
    g = _gelu_tanh(x1) * x2 * params["bias_vec"]
    return g @ w_eff.T + b_eff


if __name__ == "__main__":
    batch, seq, in_embed = 2, 8, 32
    key = jax.random.PRNGKey(0)
    k_param, k_noise, k_x = jax.random.split(key, 3)

    params = init_params(k_param, in_embed)
    x = jax.random.normal(k_x, (batch, seq, in_embed), jnp.float32)

    ref = wave_expert_reference(x, params, k_noise)

    # f32 compute path: tight numerical check of the fused kernel structure.
    expert_f32 = prepare_expert(params, compute_dtype=jnp.float32)
    out_f32 = jax.block_until_ready(wave_expert_forward(x, expert_f32, k_noise))
    assert out_f32.shape == (batch, seq, in_embed)
    assert jnp.allclose(out_f32, ref, atol=1e-4, rtol=1e-4), "f32 mismatch vs reference"

    # bf16 compute path (default, MXU-optimized): loose check.
    expert_bf16 = prepare_expert(params, compute_dtype=jnp.bfloat16)
    out_bf16 = jax.block_until_ready(wave_expert_forward(x, expert_bf16, k_noise))
    assert out_bf16.shape == (batch, seq, in_embed)
    assert jnp.allclose(out_bf16, ref, atol=6e-2, rtol=6e-2), "bf16 mismatch vs reference"

    print("KERNEL_OK")
</pallas_src>

<mosaic_0001>
module attributes {stable_mosaic.version = 11 : i64} {
  func.func @wave_expert_kernel(%arg0: i32, %arg1: memref<16x32xf32, #tpu.memory_space<vmem>>, %arg2: memref<32x32xf32, #tpu.memory_space<vmem>>, %arg3: memref<32x32xf32, #tpu.memory_space<vmem>>, %arg4: memref<1x32xf32, #tpu.memory_space<vmem>>, %arg5: memref<32x32xf32, #tpu.memory_space<vmem>>, %arg6: memref<1x32xf32, #tpu.memory_space<vmem>>, %arg7: memref<16x32xf32, #tpu.memory_space<vmem>>) attributes {dimension_semantics = [#tpu.dimension_semantics<parallel>], iteration_bounds = array<i64: 1>, scalar_prefetch = 0 : i64, scratch_operands = 0 : i64, tpu.core_type = #tpu.core_type<tc>, window_params = [{transform_indices = @transform_0, window_bounds = array<i64: 16, 32>}, {pipeline_mode = #tpu.pipeline_mode<synchronous>, transform_indices = @transform_1, window_bounds = array<i64: 32, 32>}, {pipeline_mode = #tpu.pipeline_mode<synchronous>, transform_indices = @transform_2, window_bounds = array<i64: 32, 32>}, {pipeline_mode = #tpu.pipeline_mode<synchronous>, transform_indices = @transform_3, window_bounds = array<i64: 1, 32>}, {pipeline_mode = #tpu.pipeline_mode<synchronous>, transform_indices = @transform_4, window_bounds = array<i64: 32, 32>}, {pipeline_mode = #tpu.pipeline_mode<synchronous>, transform_indices = @transform_5, window_bounds = array<i64: 1, 32>}, {transform_indices = @transform_6, window_bounds = array<i64: 16, 32>}]} {
    %c0 = arith.constant 0 : index
    %c0_0 = arith.constant 0 : index
    %0 = vector.load %arg1[%c0, %c0_0] : memref<16x32xf32, #tpu.memory_space<vmem>>, vector<16x32xf32>
    %c0_1 = arith.constant 0 : index
    %c0_2 = arith.constant 0 : index
    %1 = vector.load %arg2[%c0_1, %c0_2] : memref<32x32xf32, #tpu.memory_space<vmem>>, vector<32x32xf32>
    %cst = arith.constant dense<0.000000e+00> : vector<16x32xf32>
    %2 = tpu.matmul %0, %1, %cst {dimension_numbers = #tpu.dot_dimension_numbers<[1], [0], [0], [1], [0, 0, 1, 1], [], []>} : vector<16x32xf32>, vector<32x32xf32>, vector<16x32xf32> -> vector<16x32xf32>
    %c0_3 = arith.constant 0 : index
    %c0_4 = arith.constant 0 : index
    %3 = vector.load %arg3[%c0_3, %c0_4] : memref<32x32xf32, #tpu.memory_space<vmem>>, vector<32x32xf32>
    %cst_5 = arith.constant dense<0.000000e+00> : vector<16x32xf32>
    %4 = tpu.matmul %0, %3, %cst_5 {dimension_numbers = #tpu.dot_dimension_numbers<[1], [0], [0], [1], [0, 0, 1, 1], [], []>} : vector<16x32xf32>, vector<32x32xf32>, vector<16x32xf32> -> vector<16x32xf32>
    %cst_6 = arith.constant 5.000000e-01 : f32
    %5 = vector.broadcast %cst_6 : f32 to vector<16x32xf32>
    %6 = arith.mulf %5, %2 : vector<16x32xf32>
    %cst_7 = arith.constant 4.471500e-02 : f32
    %7 = vector.broadcast %cst_7 : f32 to vector<16x32xf32>
    %8 = arith.mulf %7, %2 : vector<16x32xf32>
    %9 = arith.mulf %8, %2 : vector<16x32xf32>
    %10 = arith.mulf %9, %2 : vector<16x32xf32>
    %11 = arith.addf %2, %10 : vector<16x32xf32>
    %cst_8 = arith.constant 0.797884583 : f32
    %12 = vector.broadcast %cst_8 : f32 to vector<16x32xf32>
    %13 = arith.mulf %12, %11 : vector<16x32xf32>
    %14 = math.tanh %13 : vector<16x32xf32>
    %cst_9 = arith.constant 1.000000e+00 : f32
    %15 = vector.broadcast %cst_9 : f32 to vector<16x32xf32>
    %16 = arith.addf %15, %14 : vector<16x32xf32>
    %17 = arith.mulf %6, %16 : vector<16x32xf32>
    %18 = arith.mulf %17, %4 : vector<16x32xf32>
    %c0_10 = arith.constant 0 : index
    %c0_11 = arith.constant 0 : index
    %19 = vector.load %arg4[%c0_10, %c0_11] : memref<1x32xf32, #tpu.memory_space<vmem>>, vector<1x32xf32>
    %20 = vector.broadcast %19 : vector<1x32xf32> to vector<16x32xf32>
    %21 = arith.mulf %18, %20 : vector<16x32xf32>
    %c0_12 = arith.constant 0 : index
    %c0_13 = arith.constant 0 : index
    %22 = vector.load %arg5[%c0_12, %c0_13] : memref<32x32xf32, #tpu.memory_space<vmem>>, vector<32x32xf32>
    %cst_14 = arith.constant dense<0.000000e+00> : vector<16x32xf32>
    %23 = tpu.matmul %21, %22, %cst_14 {dimension_numbers = #tpu.dot_dimension_numbers<[1], [0], [0], [1], [0, 0, 1, 1], [], []>} : vector<16x32xf32>, vector<32x32xf32>, vector<16x32xf32> -> vector<16x32xf32>
    %c0_15 = arith.constant 0 : index
    %c0_16 = arith.constant 0 : index
    %24 = vector.load %arg6[%c0_15, %c0_16] : memref<1x32xf32, #tpu.memory_space<vmem>>, vector<1x32xf32>
    %25 = vector.broadcast %24 : vector<1x32xf32> to vector<16x32xf32>
    %26 = arith.addf %23, %25 : vector<16x32xf32>
    %c0_17 = arith.constant 0 : index
    %c0_18 = arith.constant 0 : index
    %27 = vector.load %arg7[%c0_17, %c0_18] : memref<16x32xf32, #tpu.memory_space<vmem>>, vector<16x32xf32>
    tpu.vector_store %arg7[%c0_17, %c0_18], %26 {strides = array<i32>} : memref<16x32xf32, #tpu.memory_space<vmem>>, vector<16x32xf32>,
    return
  }
  func.func @transform_0(%arg0: i32) -> (i32, i32) {
    %c0_i32 = arith.constant 0 : i32
    %c0_i32_0 = arith.constant 0 : i32
    return %arg0, %c0_i32 : i32, i32
  }
  func.func @transform_1(%arg0: i32) -> (i32, i32) {
    %c0_i32 = arith.constant 0 : i32
    %c0_i32_0 = arith.constant 0 : i32
    %c0_i32_1 = arith.constant 0 : i32
    return %c0_i32, %c0_i32_0 : i32, i32
  }
  func.func @transform_2(%arg0: i32) -> (i32, i32) {
    %c0_i32 = arith.constant 0 : i32
    %c0_i32_0 = arith.constant 0 : i32
    %c0_i32_1 = arith.constant 0 : i32
    return %c0_i32, %c0_i32_0 : i32, i32
  }
  func.func @transform_3(%arg0: i32) -> (i32, i32) {
    %c0_i32 = arith.constant 0 : i32
    %c0_i32_0 = arith.constant 0 : i32
    %c0_i32_1 = arith.constant 0 : i32
    return %c0_i32, %c0_i32_0 : i32, i32
  }
  func.func @transform_4(%arg0: i32) -> (i32, i32) {
    %c0_i32 = arith.constant 0 : i32
    %c0_i32_0 = arith.constant 0 : i32
    %c0_i32_1 = arith.constant 0 : i32
    return %c0_i32, %c0_i32_0 : i32, i32
  }
  func.func @transform_5(%arg0: i32) -> (i32, i32) {
    %c0_i32 = arith.constant 0 : i32
    %c0_i32_0 = arith.constant 0 : i32
    %c0_i32_1 = arith.constant 0 : i32
    return %c0_i32, %c0_i32_0 : i32, i32
  }
  func.func @transform_6(%arg0: i32) -> (i32, i32) {
    %c0_i32 = arith.constant 0 : i32
    %c0_i32_0 = arith.constant 0 : i32
    return %arg0, %c0_i32 : i32, i32
  }
}

module attributes {stable_mosaic.version = 11 : i64} {
  func.func @wave_expert_kernel(%arg0: i32, %arg1: memref<16x32xf32, #tpu.memory_space<vmem>>, %arg2: memref<32x32xf32, #tpu.memory_space<vmem>>, %arg3: memref<32x32xf32, #tpu.memory_space<vmem>>, %arg4: memref<1x32xf32, #tpu.memory_space<vmem>>, %arg5: memref<32x32xf32, #tpu.memory_space<vmem>>, %arg6: memref<1x32xf32, #tpu.memory_space<vmem>>, %arg7: memref<16x32xf32, #tpu.memory_space<vmem>>) attributes {dimension_semantics = [#tpu.dimension_semantics<parallel>], iteration_bounds = array<i64: 1>, scalar_prefetch = 0 : i64, scratch_operands = 0 : i64, tpu.core_type = #tpu.core_type<tc>, window_params = [{transform_indices = @transform_0, window_bounds = array<i64: 16, 32>}, {pipeline_mode = #tpu.pipeline_mode<synchronous>, transform_indices = @transform_1, window_bounds = array<i64: 32, 32>}, {pipeline_mode = #tpu.pipeline_mode<synchronous>, transform_indices = @transform_2, window_bounds = array<i64: 32, 32>}, {pipeline_mode = #tpu.pipeline_mode<synchronous>, transform_indices = @transform_3, window_bounds = array<i64: 1, 32>}, {pipeline_mode = #tpu.pipeline_mode<synchronous>, transform_indices = @transform_4, window_bounds = array<i64: 32, 32>}, {pipeline_mode = #tpu.pipeline_mode<synchronous>, transform_indices = @transform_5, window_bounds = array<i64: 1, 32>}, {transform_indices = @transform_6, window_bounds = array<i64: 16, 32>}]} {
    %c0 = arith.constant 0 : index
    %c0_0 = arith.constant 0 : index
    %0 = vector.load %arg1[%c0, %c0_0] : memref<16x32xf32, #tpu.memory_space<vmem>>, vector<16x32xf32>
    %c0_1 = arith.constant 0 : index
    %c0_2 = arith.constant 0 : index
    %1 = vector.load %arg2[%c0_1, %c0_2] : memref<32x32xf32, #tpu.memory_space<vmem>>, vector<32x32xf32>
    %cst = arith.constant dense<0.000000e+00> : vector<16x32xf32>
    %2 = tpu.matmul %0, %1, %cst {dimension_numbers = #tpu.dot_dimension_numbers<[1], [0], [0], [1], [0, 0, 1, 1], [], []>} : vector<16x32xf32>, vector<32x32xf32>, vector<16x32xf32> -> vector<16x32xf32>
    %c0_3 = arith.constant 0 : index
    %c0_4 = arith.constant 0 : index
    %3 = vector.load %arg3[%c0_3, %c0_4] : memref<32x32xf32, #tpu.memory_space<vmem>>, vector<32x32xf32>
    %cst_5 = arith.constant dense<0.000000e+00> : vector<16x32xf32>
    %4 = tpu.matmul %0, %3, %cst_5 {dimension_numbers = #tpu.dot_dimension_numbers<[1], [0], [0], [1], [0, 0, 1, 1], [], []>} : vector<16x32xf32>, vector<32x32xf32>, vector<16x32xf32> -> vector<16x32xf32>
    %cst_6 = arith.constant 5.000000e-01 : f32
    %5 = vector.broadcast %cst_6 : f32 to vector<16x32xf32>
    %6 = arith.mulf %5, %2 : vector<16x32xf32>
    %cst_7 = arith.constant 4.471500e-02 : f32
    %7 = vector.broadcast %cst_7 : f32 to vector<16x32xf32>
    %8 = arith.mulf %7, %2 : vector<16x32xf32>
    %9 = arith.mulf %8, %2 : vector<16x32xf32>
    %10 = arith.mulf %9, %2 : vector<16x32xf32>
    %11 = arith.addf %2, %10 : vector<16x32xf32>
    %cst_8 = arith.constant 0.797884583 : f32
    %12 = vector.broadcast %cst_8 : f32 to vector<16x32xf32>
    %13 = arith.mulf %12, %11 : vector<16x32xf32>
    %14 = math.tanh %13 : vector<16x32xf32>
    %cst_9 = arith.constant 1.000000e+00 : f32
    %15 = vector.broadcast %cst_9 : f32 to vector<16x32xf32>
    %16 = arith.addf %15, %14 : vector<16x32xf32>
    %17 = arith.mulf %6, %16 : vector<16x32xf32>
    %18 = arith.mulf %17, %4 : vector<16x32xf32>
    %c0_10 = arith.constant 0 : index
    %c0_11 = arith.constant 0 : index
    %19 = vector.load %arg4[%c0_10, %c0_11] : memref<1x32xf32, #tpu.memory_space<vmem>>, vector<1x32xf32>
    %20 = vector.broadcast %19 : vector<1x32xf32> to vector<16x32xf32>
    %21 = arith.mulf %18, %20 : vector<16x32xf32>
    %c0_12 = arith.constant 0 : index
    %c0_13 = arith.constant 0 : index
    %22 = vector.load %arg5[%c0_12, %c0_13] : memref<32x32xf32, #tpu.memory_space<vmem>>, vector<32x32xf32>
    %cst_14 = arith.constant dense<0.000000e+00> : vector<16x32xf32>
    %23 = tpu.matmul %21, %22, %cst_14 {dimension_numbers = #tpu.dot_dimension_numbers<[1], [0], [0], [1], [0, 0, 1, 1], [], []>} : vector<16x32xf32>, vector<32x32xf32>, vector<16x32xf32> -> vector<16x32xf32>
    %c0_15 = arith.constant 0 : index
    %c0_16 = arith.constant 0 : index
    %24 = vector.load %arg6[%c0_15, %c0_16] : memref<1x32xf32, #tpu.memory_space<vmem>>, vector<1x32xf32>
    %25 = vector.broadcast %24 : vector<1x32xf32> to vector<16x32xf32>
    %26 = arith.addf %23, %25 : vector<16x32xf32>
    %c0_17 = arith.constant 0 : index
    %c0_18 = arith.constant 0 : index
    %27 = vector.load %arg7[%c0_17, %c0_18] : memref<16x32xf32, #tpu.memory_space<vmem>>, vector<16x32xf32>
    tpu.vector_store %arg7[%c0_17, %c0_18], %26 {strides = array<i32>} : memref<16x32xf32, #tpu.memory_space<vmem>>, vector<16x32xf32>,
    return
  }
  func.func @transform_0(%arg0: i32) -> (i32, i32) {
    %c0_i32 = arith.constant 0 : i32
    %c0_i32_0 = arith.constant 0 : i32
    return %arg0, %c0_i32 : i32, i32
  }
  func.func @transform_1(%arg0: i32) -> (i32, i32) {
    %c0_i32 = arith.constant 0 : i32
    %c0_i32_0 = arith.constant 0 : i32
    %c0_i32_1 = arith.constant 0 : i32
    return %c0_i32, %c0_i32_0 : i32, i32
  }
  func.func @transform_2(%arg0: i32) -> (i32, i32) {
    %c0_i32 = arith.constant 0 : i32
    %c0_i32_0 = arith.constant 0 : i32
    %c0_i32_1 = arith.constant 0 : i32
    return %c0_i32, %c0_i32_0 : i32, i32
  }
  func.func @transform_3(%arg0: i32) -> (i32, i32) {
    %c0_i32 = arith.constant 0 : i32
    %c0_i32_0 = arith.constant 0 : i32
    %c0_i32_1 = arith.constant 0 : i32
    return %c0_i32, %c0_i32_0 : i32, i32
  }
  func.func @transform_4(%arg0: i32) -> (i32, i32) {
    %c0_i32 = arith.constant 0 : i32
    %c0_i32_0 = arith.constant 0 : i32
    %c0_i32_1 = arith.constant 0 : i32
    return %c0_i32, %c0_i32_0 : i32, i32
  }
  func.func @transform_5(%arg0: i32) -> (i32, i32) {
    %c0_i32 = arith.constant 0 : i32
    %c0_i32_0 = arith.constant 0 : i32
    %c0_i32_1 = arith.constant 0 : i32
    return %c0_i32, %c0_i32_0 : i32, i32
  }
  func.func @transform_6(%arg0: i32) -> (i32, i32) {
    %c0_i32 = arith.constant 0 : i32
    %c0_i32_0 = arith.constant 0 : i32
    return %arg0, %c0_i32 : i32, i32
  }
}

</mosaic_0001>

<bundles_post_ra>
// kernel: tpu_custom_call.1
= control target key start
LH: loop header
LB: loop body
LE: loop exit
PB: predicated region body
PF: predicated region fallthrough
CT: control target
= control target key end

     0   :  { %11 = vsyncpa [#allocation3], 0  ;;  %s652_s0 = inlined_call_operand.hbm [shape: f32[16,32], index: 0, kind: input, shape index: {}]   ;;  %s653_s1 = inlined_call_operand.hbm [shape: f32[32,32], index: 1, kind: input, shape index: {}]   ;;  %s654_s2 = inlined_call_operand.hbm [shape: f32[32,32], index: 2, kind: input, shape index: {}]   ;;  %s655_s3 = inlined_call_operand.vmem [shape: f32[1,32], index: 3, kind: input, shape index: {}]   ;;  %s656_s4 = inlined_call_operand.hbm [shape: f32[32,32], index: 4, kind: input, shape index: {}]   ;;  %s657_s5 = inlined_call_operand.vmem [shape: f32[1,32], index: 5, kind: input, shape index: {}]   ;;  %s658_s6 = inlined_call_operand.hbm [shape: f32[16,32], index: 6, kind: output, shape index: {}]  }
   0x1   :  { %12 = vsyncpa [#allocation6], 0 }
   0x2   :  { %13 = vsyncpa [#allocation9], 0 }
   0x3   :  { %14 = vsyncpa [#allocation4], 0  ;;  %s566_s21 = smov [#allocation5]   ;;  %s567_s23 = smov [#allocation2]  }
   0x4   :  { %s32_s22 = sshll.u32 %s566_s21, 4  ;;  %s20_s24 = sshll.u32 %s567_s23, 4  ;;  %s33_s22 = int_to_ptr.vmem [resolvable:$true] %s32_s22  ;;  %s21_s24 = int_to_ptr.vmem [resolvable:$true] %s20_s24 }
   0x5   :  { %s466_s25 = scalar_lea.vmem %s33_s22, 512  ;;  %p471_p1 = scmp.lt.s32.totalorder %s33_s22, %s33_s22 }
   0x6   :  { %p467_p0 = scmp.ne.s32.totalorder %s33_s22, %s466_s25  ;;  %p472_p2 = scmp.lt.s32.totalorder %s466_s25, %s466_s25 }
   0x8   :  { %p473_p3 = por %p472_p2, %p471_p1 }
   0xa   :  { %p474_p4 = pnand %p473_p3, %p467_p0 }
   0xc   :  { %477 = shalt.err (!%p474_p4)
}
   0xd   :  { %s568_s26 = smov 128   ;;  %s569_s27 = smov 8  }
   0xe   :  { %38 = dma.hbm_to_vmem [thread:$0]  %s653_s1, 512, %s33_s22, [#allocation6], %s568_s26, %s568_s26, %s569_s27  }
   0xf   :  { %s486_s30 = scalar_lea.vmem %s21_s24, 256  ;;  %p491_p6 = scmp.lt.s32.totalorder %s21_s24, %s21_s24 }
  0x10   :  { %p487_p5 = scmp.ne.s32.totalorder %s21_s24, %s486_s30  ;;  %p492_p7 = scmp.lt.s32.totalorder %s486_s30, %s486_s30 }
  0x12   :  { %p493_p8 = por %p492_p7, %p491_p6 }
  0x14   :  { %p494_p9 = pnand %p493_p8, %p487_p5 }
  0x16   :  { %497 = shalt.err (!%p494_p9)
}
  0x17   :  { %26 = dma.hbm_to_vmem [thread:$0]  %s652_s0, 256, %s21_s24, [#allocation3], %s568_s26, %s568_s26, %s569_s27  }
  0x18   :  { %s570_s9 = smov [#allocation7]   ;;  %s571_s11 = smov [#allocation8]  }
  0x19   :  { %s44_s10 = sshll.u32 %s570_s9, 4  ;;  %s58_s12 = sshll.u32 %s571_s11, 4  ;;  %s45_s10 = int_to_ptr.vmem [resolvable:$true] %s44_s10  ;;  %s59_s12 = int_to_ptr.vmem [resolvable:$true] %s58_s12 }
  0x1a   :  { %s506_s1 = scalar_lea.vmem %s45_s10, 512  ;;  %p511_p11 = scmp.lt.s32.totalorder %s45_s10, %s45_s10 }
  0x1b   :  { %p507_p10 = scmp.ne.s32.totalorder %s45_s10, %s506_s1  ;;  %p512_p12 = scmp.lt.s32.totalorder %s506_s1, %s506_s1 }
  0x1d   :  { %p513_p13 = por %p512_p12, %p511_p11 }
  0x1f   :  { %p514_p0 = pnand %p513_p13, %p507_p10 }
  0x21   :  { %517 = shalt.err (!%p514_p0)
}
  0x22   :  { %50 = dma.hbm_to_vmem [thread:$0]  %s654_s2, 512, %s45_s10, [#allocation6], %s568_s26, %s568_s26, %s569_s27  }
  0x23   :  { %s526_s0 = scalar_lea.vmem %s59_s12, 512  ;;  %p531_p2 = scmp.lt.s32.totalorder %s59_s12, %s59_s12 }
  0x24   :  { %p527_p1 = scmp.ne.s32.totalorder %s59_s12, %s526_s0  ;;  %p532_p3 = scmp.lt.s32.totalorder %s526_s0, %s526_s0 }
  0x26   :  { %p533_p4 = por %p532_p3, %p531_p2 }
  0x28   :  { %p534_p5 = pnand %p533_p4, %p527_p1 }
  0x2a   :  { %537 = shalt.err (!%p534_p5)
}
  0x2b   :  { %64 = dma.hbm_to_vmem [thread:$0]  %s656_s4, 512, %s59_s12, [#allocation9], %s568_s26, %s568_s26, %s569_s27  }
  0x2c   :  { %558 = dma.done.wait [#allocation3], 256  }
  0x2d   :  { %559 = vsyncadd [#allocation3], 4294967040 }
  0x2e   :  { %560 = dma.done.wait [#allocation6], 1024  }
  0x2f   :  { %561 = vsyncadd [#allocation6], 4294966272 }
  0x30   :  { %562 = dma.done.wait [#allocation9], 512  }
  0x31   :  { %563 = vsyncadd [#allocation9], 4294966784  ;;  %vm85_vm0 = vcmask 261120   ;;  %v84_v0 = vld [vmem:[#allocation5 + $0x18] sm:$0xff]  ;;  %v83_v1 = vld [vmem:[#allocation5 + $0x10] sm:$0xff]  ;;  %s572_s19 = smov [#allocation10]  }
  0x32   :  { %414 = vmatprep.subr.mxu0 %v84_v0  ;;  %v79_v2 = vld [vmem:[#allocation2] sm:$0xff]  ;;  %v82_v3 = vld [vmem:[#allocation5 + $0x8] sm:$0xff]  ;;  %v170_v4 = vld [vmem:[#allocation7 + $0x18] sm:$0xff]  ;;  %s374_s20 = sshll.u32 %s572_s19, 4  ;;  %s375_s20 = int_to_ptr.vmem [resolvable:$true] %s374_s20 }
  0x33   :  { %415 = vmatpush3.msra.mxu0 %v84_v0  ;;  %422 = vmatprep.mubr.msk.f32.mxu0 %vm85_vm0, %v79_v2  ;;  %v169_v5 = vld [vmem:[#allocation7 + $0x10] sm:$0xff]  ;;  %v81_v6 = vld [vmem:[#allocation5] sm:$0xff]  ;;  %v168_v7 = vld [vmem:[#allocation7 + $0x8] sm:$0xff]  ;;  %p543_p7 = scmp.lt.s32.totalorder %s375_s20, %s375_s20 }
  0x34   :  { %416 = vmatprep.subr.mxu0 %v83_v1  ;;  %425 = vmatprep.subr.mxu1 %v170_v4  ;;  %v80_v8 = vld [vmem:[#allocation2 + $0x8] sm:$0xff]  ;;  %v167_v9 = vld [vmem:[#allocation7] sm:$0xff]  ;;  %v277_v11 = vld [vmem:[#allocation8 + $0x10] sm:$0xff] }
  0x35   :  { %417 = vmatpush3.msra.mxu0 %v83_v1  ;;  %426 = vmatpush3.msra.mxu1 %v170_v4  ;;  %v278_v10 = vld [vmem:[#allocation8 + $0x18] sm:$0xff]  ;;  %v276_v12 = vld [vmem:[#allocation8 + $0x8] sm:$0xff]  ;;  %v275_v13 = vld [vmem:[#allocation8] sm:$0xff] }
  0x36   :  { %418 = vmatprep.subr.mxu0 %v82_v3  ;;  %427 = vmatprep.subr.mxu1 %v169_v5  ;;  %v392_v37 = vld [vmem:[%s655_s3] ss:$0 sm:$0xff]  ;;  %s538_s3 = scalar_lea.vmem %s375_s20, 256 }
  0x37   :  { %419 = vmatpush3.msra.mxu0 %v82_v3  ;;  %428 = vmatpush3.msra.mxu1 %v169_v5  ;;  %v393_v41 = vld [vmem:[%s657_s5] ss:$0 sm:$0xff]  ;;  %p539_p6 = scmp.ne.s32.totalorder %s375_s20, %s538_s3  ;;  %p544_p8 = scmp.lt.s32.totalorder %s538_s3, %s538_s3 }
  0x38   :  { %420 = vmatprep.subr.mxu0 %v81_v6  ;;  %429 = vmatprep.subr.mxu1 %v168_v7 }
  0x39   :  { %421 = vmatpush3.msra.mxu0 %v81_v6  ;;  %430 = vmatpush3.msra.mxu1 %v168_v7  ;;  %p545_p9 = por %p544_p8, %p543_p7 }
  0x3a   :  { %423 = vmatmul.mubr.msk.f32.vlgmr.msra.gmra.mxu0 %vm85_vm0, %v80_v8  ;;  %431 = vmatprep.subr.mxu1 %v167_v9 }
  0x3b   :  { %432 = vmatpush3.msra.mxu1 %v167_v9  ;;  %433 = vmatprep.mubr.msk.f32.mxu1 %vm85_vm0, %v79_v2  ;;  %p546_p10 = pnand %p545_p9, %p539_p6 }
  0x3c   :  { %434 = vmatmul.mubr.msk.f32.vlgmr.msra.gmra.mxu1 %vm85_vm0, %v80_v8  ;;  %436 = vmatprep.subr.mxu0 %v278_v10 }
  0x3d   :  { %437 = vmatpush3.msra.mxu0 %v278_v10 }
  0x3e   :  { %438 = vmatprep.subr.mxu0 %v277_v11 }
  0x3f   :  { %439 = vmatpush3.msra.mxu0 %v277_v11 }
  0x40   :  { %440 = vmatprep.subr.mxu0 %v276_v12 }
  0x41   :  { %441 = vmatpush3.msra.mxu0 %v276_v12 }
  0x42   :  { %442 = vmatprep.subr.mxu0 %v275_v13 }
  0x43   :  { %443 = vmatpush3.msra.mxu0 %v275_v13 }
  0xfa   :  { %v424_v14 = vpop.f32.mrf.mxu0 }
  0xfb   :  { %v249_v15 = vmul.f32 0.044715, %v424_v14  ;;  %v247_v27 = vmul.f32 0.5, %v424_v14 }
  0xfc   :  { %v158_v16 = vpop.f32.mrf.mxu0  ;;  %v435_v30 = vpop.f32.mrf.mxu1 }
  0xfd   :  { %v251_v17 = vmul.f32 %v424_v14, %v249_v15  ;;  %v248_v18 = vmul.f32 0.044715, %v158_v16  ;;  %v246_v32 = vmul.f32 0.5, %v158_v16 }
  0xfe   :  { %v237_v36 = vpop.f32.mrf.mxu1 }
  0xff   :  { %v253_v19 = vmul.f32 %v424_v14, %v251_v17  ;;  %v250_v20 = vmul.f32 %v248_v18, %v158_v16 }
 0x101   :  { %v255_v21 = vadd.f32 %v424_v14, %v253_v19  ;;  %v252_v22 = vmul.f32 %v250_v20, %v158_v16 }
 0x103   :  { %v254_v23 = vadd.f32 %v252_v22, %v158_v16  ;;  %v257_v24 = vmul.f32 0.7978846, %v255_v21 }
 0x105   :  { %454 = vtanh.f32 %v257_v24  ;;  %v256_v25 = vmul.f32 0.7978846, %v254_v23 }
 0x107   :  { %456 = vtanh.f32 %v256_v25 }
 0x112   :  { %v455_v26 = vpop.eup %454 }
 0x113   :  { %v261_v28 = vadd.f32 1.0, %v455_v26 }
 0x114   :  { %v457_v29 = vpop.eup %456 }
 0x115   :  { %v263_v31 = vmul.f32 %v261_v28, %v247_v27  ;;  %v260_v33 = vadd.f32 1.0, %v457_v29 }
 0x117   :  { %v262_v34 = vmul.f32 %v260_v33, %v246_v32  ;;  %v265_v35 = vmul.f32 %v435_v30, %v263_v31 }
 0x119   :  { %v264_v38 = vmul.f32 %v262_v34, %v237_v36  ;;  %v274_v40 = vmul.f32 %v392_v37, %v265_v35 }
 0x11b   :  { %v273_v39 = vmul.f32 %v392_v37, %v264_v38 }
 0x11d   :  { %444 = vmatprep.mubr.msk.f32.mxu0 %vm85_vm0, %v273_v39 }
 0x11e   :  { %445 = vmatmul.mubr.msk.f32.vlgmr.msra.gmra.mxu0 %vm85_vm0, %v274_v40 }
 0x1de   :  { %v446_v42 = vpop.f32.mrf.mxu0 }
 0x1df   :  { %v364_v43 = vadd.f32 %v446_v42, %v393_v41 }
 0x1e0   :  { %v358_v44 = vpop.f32.mrf.mxu0 }
 0x1e1   :  { %368 = vst.msk [vmem:[#allocation10 + $0x8] sm:$0xff] %vm85_vm0, %v364_v43  ;;  %v359_v45 = vadd.f32 %v393_v41, %v358_v44 }
 0x1e3   :  { %367 = vst.msk [vmem:[#allocation10] sm:$0xff] %vm85_vm0, %v359_v45 }
 0x1e4   :  { %549 = shalt.err (!%p546_p10)
}
 0x1e5   :  { %380 = dma.vmem_to_hbm [thread:$0]  %s375_s20, 256, %s658_s6, [#allocation4], %s568_s26, %s568_s26, %s569_s27  }
 0x1e6   :  { %564 = dma.done.wait [#allocation4], 256  }
 0x1e7   :  { %565 = vsyncadd [#allocation4], 4294967040 }
 0x1e8   :  { %384 = vsyncpa [#allocation3], 1 }
 0x1e9   :  { %385 = vsyncpa [#allocation6], 1 }
 0x1ea   :  { %386 = vsyncpa [#allocation9], 1 }
 0x1eb   :  { %387 = vsyncpa [#allocation4], 1 }

// kernel: tpu_custom_call.1
= control target key start
LH: loop header
LB: loop body
LE: loop exit
PB: predicated region body
PF: predicated region fallthrough
CT: control target
= control target key end

     0   :  { %11 = vsyncpa [#allocation3], 0  ;;  %s652_s0 = inlined_call_operand.hbm [shape: f32[16,32], index: 0, kind: input, shape index: {}]   ;;  %s653_s1 = inlined_call_operand.hbm [shape: f32[32,32], index: 1, kind: input, shape index: {}]   ;;  %s654_s2 = inlined_call_operand.hbm [shape: f32[32,32], index: 2, kind: input, shape index: {}]   ;;  %s655_s3 = inlined_call_operand.vmem [shape: f32[1,32], index: 3, kind: input, shape index: {}]   ;;  %s656_s4 = inlined_call_operand.hbm [shape: f32[32,32], index: 4, kind: input, shape index: {}]   ;;  %s657_s5 = inlined_call_operand.vmem [shape: f32[1,32], index: 5, kind: input, shape index: {}]   ;;  %s658_s6 = inlined_call_operand.hbm [shape: f32[16,32], index: 6, kind: output, shape index: {}]  }
   0x1   :  { %12 = vsyncpa [#allocation6], 0 }
   0x2   :  { %13 = vsyncpa [#allocation9], 0 }
   0x3   :  { %14 = vsyncpa [#allocation4], 0  ;;  %s566_s21 = smov [#allocation5]   ;;  %s567_s23 = smov [#allocation2]  }
   0x4   :  { %s32_s22 = sshll.u32 %s566_s21, 4  ;;  %s20_s24 = sshll.u32 %s567_s23, 4  ;;  %s33_s22 = int_to_ptr.vmem [resolvable:$true] %s32_s22  ;;  %s21_s24 = int_to_ptr.vmem [resolvable:$true] %s20_s24 }
   0x5   :  { %s466_s25 = scalar_lea.vmem %s33_s22, 512  ;;  %p471_p1 = scmp.lt.s32.totalorder %s33_s22, %s33_s22 }
   0x6   :  { %p467_p0 = scmp.ne.s32.totalorder %s33_s22, %s466_s25  ;;  %p472_p2 = scmp.lt.s32.totalorder %s466_s25, %s466_s25 }
   0x8   :  { %p473_p3 = por %p472_p2, %p471_p1 }
   0xa   :  { %p474_p4 = pnand %p473_p3, %p467_p0 }
   0xc   :  { %477 = shalt.err (!%p474_p4)
}
   0xd   :  { %s568_s26 = smov 128   ;;  %s569_s27 = smov 8  }
   0xe   :  { %38 = dma.hbm_to_vmem [thread:$0]  %s653_s1, 512, %s33_s22, [#allocation6], %s568_s26, %s568_s26, %s569_s27  }
   0xf   :  { %s486_s30 = scalar_lea.vmem %s21_s24, 256  ;;  %p491_p6 = scmp.lt.s32.totalorder %s21_s24, %s21_s24 }
  0x10   :  { %p487_p5 = scmp.ne.s32.totalorder %s21_s24, %s486_s30  ;;  %p492_p7 = scmp.lt.s32.totalorder %s486_s30, %s486_s30 }
  0x12   :  { %p493_p8 = por %p492_p7, %p491_p6 }
  0x14   :  { %p494_p9 = pnand %p493_p8, %p487_p5 }
  0x16   :  { %497 = shalt.err (!%p494_p9)
}
  0x17   :  { %26 = dma.hbm_to_vmem [thread:$0]  %s652_s0, 256, %s21_s24, [#allocation3], %s568_s26, %s568_s26, %s569_s27  }
  0x18   :  { %s570_s9 = smov [#allocation7]   ;;  %s571_s11 = smov [#allocation8]  }
  0x19   :  { %s44_s10 = sshll.u32 %s570_s9, 4  ;;  %s58_s12 = sshll.u32 %s571_s11, 4  ;;  %s45_s10 = int_to_ptr.vmem [resolvable:$true] %s44_s10  ;;  %s59_s12 = int_to_ptr.vmem [resolvable:$true] %s58_s12 }
  0x1a   :  { %s506_s1 = scalar_lea.vmem %s45_s10, 512  ;;  %p511_p11 = scmp.lt.s32.totalorder %s45_s10, %s45_s10 }
  0x1b   :  { %p507_p10 = scmp.ne.s32.totalorder %s45_s10, %s506_s1  ;;  %p512_p12 = scmp.lt.s32.totalorder %s506_s1, %s506_s1 }
  0x1d   :  { %p513_p13 = por %p512_p12, %p511_p11 }
  0x1f   :  { %p514_p0 = pnand %p513_p13, %p507_p10 }
  0x21   :  { %517 = shalt.err (!%p514_p0)
}
  0x22   :  { %50 = dma.hbm_to_vmem [thread:$0]  %s654_s2, 512, %s45_s10, [#allocation6], %s568_s26, %s568_s26, %s569_s27  }
  0x23   :  { %s526_s0 = scalar_lea.vmem %s59_s12, 512  ;;  %p531_p2 = scmp.lt.s32.totalorder %s59_s12, %s59_s12 }
  0x24   :  { %p527_p1 = scmp.ne.s32.totalorder %s59_s12, %s526_s0  ;;  %p532_p3 = scmp.lt.s32.totalorder %s526_s0, %s526_s0 }
  0x26   :  { %p533_p4 = por %p532_p3, %p531_p2 }
  0x28   :  { %p534_p5 = pnand %p533_p4, %p527_p1 }
  0x2a   :  { %537 = shalt.err (!%p534_p5)
}
  0x2b   :  { %64 = dma.hbm_to_vmem [thread:$0]  %s656_s4, 512, %s59_s12, [#allocation9], %s568_s26, %s568_s26, %s569_s27  }
  0x2c   :  { %558 = dma.done.wait [#allocation3], 256  }
  0x2d   :  { %559 = vsyncadd [#allocation3], 4294967040 }
  0x2e   :  { %560 = dma.done.wait [#allocation6], 1024  }
  0x2f   :  { %561 = vsyncadd [#allocation6], 4294966272 }
  0x30   :  { %562 = dma.done.wait [#allocation9], 512  }
  0x31   :  { %563 = vsyncadd [#allocation9], 4294966784  ;;  %vm85_vm0 = vcmask 261120   ;;  %v84_v0 = vld [vmem:[#allocation5 + $0x18] sm:$0xff]  ;;  %v83_v1 = vld [vmem:[#allocation5 + $0x10] sm:$0xff]  ;;  %s572_s19 = smov [#allocation10]  }
  0x32   :  { %414 = vmatprep.subr.mxu0 %v84_v0  ;;  %v79_v2 = vld [vmem:[#allocation2] sm:$0xff]  ;;  %v82_v3 = vld [vmem:[#allocation5 + $0x8] sm:$0xff]  ;;  %v170_v4 = vld [vmem:[#allocation7 + $0x18] sm:$0xff]  ;;  %s374_s20 = sshll.u32 %s572_s19, 4  ;;  %s375_s20 = int_to_ptr.vmem [resolvable:$true] %s374_s20 }
  0x33   :  { %415 = vmatpush3.msra.mxu0 %v84_v0  ;;  %422 = vmatprep.mubr.msk.f32.mxu0 %vm85_vm0, %v79_v2  ;;  %v169_v5 = vld [vmem:[#allocation7 + $0x10] sm:$0xff]  ;;  %v81_v6 = vld [vmem:[#allocation5] sm:$0xff]  ;;  %v168_v7 = vld [vmem:[#allocation7 + $0x8] sm:$0xff]  ;;  %p543_p7 = scmp.lt.s32.totalorder %s375_s20, %s375_s20 }
  0x34   :  { %416 = vmatprep.subr.mxu0 %v83_v1  ;;  %425 = vmatprep.subr.mxu1 %v170_v4  ;;  %v80_v8 = vld [vmem:[#allocation2 + $0x8] sm:$0xff]  ;;  %v167_v9 = vld [vmem:[#allocation7] sm:$0xff]  ;;  %v277_v11 = vld [vmem:[#allocation8 + $0x10] sm:$0xff] }
  0x35   :  { %417 = vmatpush3.msra.mxu0 %v83_v1  ;;  %426 = vmatpush3.msra.mxu1 %v170_v4  ;;  %v278_v10 = vld [vmem:[#allocation8 + $0x18] sm:$0xff]  ;;  %v276_v12 = vld [vmem:[#allocation8 + $0x8] sm:$0xff]  ;;  %v275_v13 = vld [vmem:[#allocation8] sm:$0xff] }
  0x36   :  { %418 = vmatprep.subr.mxu0 %v82_v3  ;;  %427 = vmatprep.subr.mxu1 %v169_v5  ;;  %v392_v37 = vld [vmem:[%s655_s3] ss:$0 sm:$0xff]  ;;  %s538_s3 = scalar_lea.vmem %s375_s20, 256 }
  0x37   :  { %419 = vmatpush3.msra.mxu0 %v82_v3  ;;  %428 = vmatpush3.msra.mxu1 %v169_v5  ;;  %v393_v41 = vld [vmem:[%s657_s5] ss:$0 sm:$0xff]  ;;  %p539_p6 = scmp.ne.s32.totalorder %s375_s20, %s538_s3  ;;  %p544_p8 = scmp.lt.s32.totalorder %s538_s3, %s538_s3 }
  0x38   :  { %420 = vmatprep.subr.mxu0 %v81_v6  ;;  %429 = vmatprep.subr.mxu1 %v168_v7 }
  0x39   :  { %421 = vmatpush3.msra.mxu0 %v81_v6  ;;  %430 = vmatpush3.msra.mxu1 %v168_v7  ;;  %p545_p9 = por %p544_p8, %p543_p7 }
  0x3a   :  { %423 = vmatmul.mubr.msk.f32.vlgmr.msra.gmra.mxu0 %vm85_vm0, %v80_v8  ;;  %431 = vmatprep.subr.mxu1 %v167_v9 }
  0x3b   :  { %432 = vmatpush3.msra.mxu1 %v167_v9  ;;  %433 = vmatprep.mubr.msk.f32.mxu1 %vm85_vm0, %v79_v2  ;;  %p546_p10 = pnand %p545_p9, %p539_p6 }
  0x3c   :  { %434 = vmatmul.mubr.msk.f32.vlgmr.msra.gmra.mxu1 %vm85_vm0, %v80_v8  ;;  %436 = vmatprep.subr.mxu0 %v278_v10 }
  0x3d   :  { %437 = vmatpush3.msra.mxu0 %v278_v10 }
  0x3e   :  { %438 = vmatprep.subr.mxu0 %v277_v11 }
  0x3f   :  { %439 = vmatpush3.msra.mxu0 %v277_v11 }
  0x40   :  { %440 = vmatprep.subr.mxu0 %v276_v12 }
  0x41   :  { %441 = vmatpush3.msra.mxu0 %v276_v12 }
  0x42   :  { %442 = vmatprep.subr.mxu0 %v275_v13 }
  0x43   :  { %443 = vmatpush3.msra.mxu0 %v275_v13 }
  0xfa   :  { %v424_v14 = vpop.f32.mrf.mxu0 }
  0xfb   :  { %v249_v15 = vmul.f32 0.044715, %v424_v14  ;;  %v247_v27 = vmul.f32 0.5, %v424_v14 }
  0xfc   :  { %v158_v16 = vpop.f32.mrf.mxu0  ;;  %v435_v30 = vpop.f32.mrf.mxu1 }
  0xfd   :  { %v251_v17 = vmul.f32 %v424_v14, %v249_v15  ;;  %v248_v18 = vmul.f32 0.044715, %v158_v16  ;;  %v246_v32 = vmul.f32 0.5, %v158_v16 }
  0xfe   :  { %v237_v36 = vpop.f32.mrf.mxu1 }
  0xff   :  { %v253_v19 = vmul.f32 %v424_v14, %v251_v17  ;;  %v250_v20 = vmul.f32 %v248_v18, %v158_v16 }
 0x101   :  { %v255_v21 = vadd.f32 %v424_v14, %v253_v19  ;;  %v252_v22 = vmul.f32 %v250_v20, %v158_v16 }
 0x103   :  { %v254_v23 = vadd.f32 %v252_v22, %v158_v16  ;;  %v257_v24 = vmul.f32 0.7978846, %v255_v21 }
 0x105   :  { %454 = vtanh.f32 %v257_v24  ;;  %v256_v25 = vmul.f32 0.7978846, %v254_v23 }
 0x107   :  { %456 = vtanh.f32 %v256_v25 }
 0x112   :  { %v455_v26 = vpop.eup %454 }
 0x113   :  { %v261_v28 = vadd.f32 1.0, %v455_v26 }
 0x114   :  { %v457_v29 = vpop.eup %456 }
 0x115   :  { %v263_v31 = vmul.f32 %v261_v28, %v247_v27  ;;  %v260_v33 = vadd.f32 1.0, %v457_v29 }
 0x117   :  { %v262_v34 = vmul.f32 %v260_v33, %v246_v32  ;;  %v265_v35 = vmul.f32 %v435_v30, %v263_v31 }
 0x119   :  { %v264_v38 = vmul.f32 %v262_v34, %v237_v36  ;;  %v274_v40 = vmul.f32 %v392_v37, %v265_v35 }
 0x11b   :  { %v273_v39 = vmul.f32 %v392_v37, %v264_v38 }
 0x11d   :  { %444 = vmatprep.mubr.msk.f32.mxu0 %vm85_vm0, %v273_v39 }
 0x11e   :  { %445 = vmatmul.mubr.msk.f32.vlgmr.msra.gmra.mxu0 %vm85_vm0, %v274_v40 }
 0x1de   :  { %v446_v42 = vpop.f32.mrf.mxu0 }
 0x1df   :  { %v364_v43 = vadd.f32 %v446_v42, %v393_v41 }
 0x1e0   :  { %v358_v44 = vpop.f32.mrf.mxu0 }
 0x1e1   :  { %368 = vst.msk [vmem:[#allocation10 + $0x8] sm:$0xff] %vm85_vm0, %v364_v43  ;;  %v359_v45 = vadd.f32 %v393_v41, %v358_v44 }
 0x1e3   :  { %367 = vst.msk [vmem:[#allocation10] sm:$0xff] %vm85_vm0, %v359_v45 }
 0x1e4   :  { %549 = shalt.err (!%p546_p10)
}
 0x1e5   :  { %380 = dma.vmem_to_hbm [thread:$0]  %s375_s20, 256, %s658_s6, [#allocation4], %s568_s26, %s568_s26, %s569_s27  }
 0x1e6   :  { %564 = dma.done.wait [#allocation4], 256  }
 0x1e7   :  { %565 = vsyncadd [#allocation4], 4294967040 }
 0x1e8   :  { %384 = vsyncpa [#allocation3], 1 }
 0x1e9   :  { %385 = vsyncpa [#allocation6], 1 }
 0x1ea   :  { %386 = vsyncpa [#allocation9], 1 }
 0x1eb   :  { %387 = vsyncpa [#allocation4], 1 }

</bundles_post_ra>
